<compile_context>
chip_gen: v6e
topology: v6e:2x2x1
jax: 0.10.0
libtpu: 0.0.40
codegen_flags: <defaults>
</compile_context>

<pallas_src>
import functools

import jax
import jax.numpy as jnp
from jax.experimental import pallas as pl
from jax.experimental.pallas import tpu as pltpu


def layernorm_kernel(x_ref, sc_ref, bc_ref, o_ref, *, eps, inv_h):
    # x_ref: (TB, H_pad) tile; sc_ref/bc_ref: (1, H_pad) params.
    # Padded lanes (if any) hold zeros and are excluded from the statistics by
    # dividing by the true hidden size (inv_h = 1/H_true).
    x = x_ref[...].astype(jnp.float32)
    mean = jnp.sum(x, axis=1, keepdims=True) * inv_h          # (TB, 1), XLU reduce
    meansq = jnp.sum(x * x, axis=1, keepdims=True) * inv_h    # single pass over x
    var = jnp.maximum(meansq - mean * mean, 0.0)               # biased (unbiased=False)
    inv = jax.lax.rsqrt(var + eps)                             # EUP
    # Fuse normalization + affine into the store expression: one live f32 temp.
    # TODO(synk): on v7x, the two row reductions could be offloaded to the MXU
    # (dot with a ones column) if this ever becomes VALU-bound.
    o_ref[...] = ((x - mean) * inv * sc_ref[...].astype(jnp.float32)
                  + bc_ref[...].astype(jnp.float32)).astype(o_ref.dtype)


def _round_up(x, m):
    return ((x + m - 1) // m) * m


_SUBLANE = {4: 8, 2: 16, 1: 32}  # packed sublane count by itemsize


def _tpu_vmem_limit_bytes():
    """Scoped VMEM limit derived from the chip's physical VMEM capacity."""
    cap = 64 * 1024 * 1024  # conservative default = v7x per-TC VMEM
    try:
        info = pltpu.get_tpu_info()
        cap = int(getattr(info, "vmem_capacity_bytes", cap))
    except Exception:
        pass
    # Leave headroom for compiler-internal scratch; ~56 MiB on 64 MiB parts
    # (v7x), ~96 MiB on 128 MiB parts (v5e/v6e).
    return max(16 * 1024 * 1024, min(cap - 8 * 1024 * 1024, 96 * 1024 * 1024))


def _num_tensorcores():
    """Best-effort TensorCores-per-device (2 on megacore-style chips)."""
    try:
        kind = str(getattr(jax.devices()[0], "device_kind", "")).lower()
        if "v7" in kind or "v5p" in kind or "v4" in kind:
            return 2
    except Exception:
        pass
    return 1


def _pick_batch_tile(batch, hidden_padded, itemsize, vmem_limit):
    """Largest VMEM-fitting batch tile, aligned to the packed sublane count."""
    sublane = _SUBLANE.get(int(itemsize), 8)

    # Per-row VMEM cost: double-buffered input + output pipeline tiles plus
    # ~2-3 live tile-sized f32 temporaries inside the kernel body (x upcast +
    # the fused output expression).  Budgeting the temps keeps max-size tiles
    # that actually fit (bf16 inputs previously blew past the limit).
    bytes_per_row = 4 * int(itemsize) * hidden_padded + 3 * 4 * hidden_padded
    tile_budget = max(1 * 1024 * 1024, vmem_limit - 4 * 1024 * 1024)
    tb = max(sublane, (tile_budget // bytes_per_row) // sublane * sublane)
    # ~85% of HBM roofline is already reached around 512 rows; bigger tiles
    # only cost VMEM (and hurt pipelining on v5e).
    tb = min(tb, 512)

    b_ceil = _round_up(batch, sublane)
    tb = min(tb, b_ceil)

    # Multi-TensorCore chips: force >= 2 grid steps *per core* so the
    # "parallel" batch axis shards across cores and each core still
    # double-buffers.  Single-TC chips keep one block when the batch fits.
    n_tc = _num_tensorcores()
    if n_tc >= 2:
        min_steps = 2 * n_tc
        if b_ceil >= min_steps * sublane:
            tb = min(tb, max(sublane, _round_up(pl.cdiv(b_ceil, min_steps), sublane)))
    return tb


def layer_norm(x, sc, bc, eps=1e-5):
    """LayerNorm over the last dim of a 2-D input (batch, hidden)."""
    B, H = x.shape
    itemsize = jnp.dtype(x.dtype).itemsize

    # Lane-dense hidden dim: pad H up to a multiple of 128 with zeros.  The
    # zero lanes contribute nothing to the sums (we divide by the true H), and
    # sc/bc are zero-padded so the padded output lanes are just sliced away.
    # Typical LayerNorm sizes (H % 128 == 0) skip this entirely.
    H_pad = _round_up(H, 128)
    if H_pad != H:
        x_in = jnp.pad(x, ((0, 0), (0, H_pad - H)))
        sc2 = jnp.pad(sc.reshape(1, H), ((0, 0), (0, H_pad - H)))
        bc2 = jnp.pad(bc.reshape(1, H), ((0, 0), (0, H_pad - H)))
    else:
        x_in, sc2, bc2 = x, sc.reshape(1, H), bc.reshape(1, H)

    vmem_limit = _tpu_vmem_limit_bytes()
    TB = _pick_batch_tile(B, H_pad, itemsize, vmem_limit)
    # No batch padding: Pallas handles the partial last block (reads of the
    # out-of-bounds rows are discarded, writes are masked); rows are
    # independent so the garbage rows never affect valid output.
    grid_b = pl.cdiv(B, TB)

    kernel = functools.partial(layernorm_kernel, eps=eps, inv_h=1.0 / H)
    out = pl.pallas_call(
        kernel,
        out_shape=jax.ShapeDtypeStruct((B, H_pad), x.dtype),
        grid_spec=pltpu.PrefetchScalarGridSpec(
            num_scalar_prefetch=0,
            grid=(grid_b,),
            in_specs=[
                pl.BlockSpec((TB, H_pad), lambda i: (i, 0)),
                pl.BlockSpec((1, H_pad), lambda i: (0, 0)),
                pl.BlockSpec((1, H_pad), lambda i: (0, 0)),
            ],
            out_specs=pl.BlockSpec((TB, H_pad), lambda i: (i, 0)),
        ),
        compiler_params=pltpu.CompilerParams(
            dimension_semantics=("parallel",),
            vmem_limit_bytes=vmem_limit,
        ),
    )(x_in, sc2, bc2)

    if H_pad != H:
        out = out[:, :H]
    return out


# TODO(synk): the module's custom backward (grad_input/grad_scale/grad_bias via
# stashed mean/var) is not implemented here; this kernel covers the forward pass.


if __name__ == "__main__":
    key = jax.random.PRNGKey(0)
    batch, hidden = 8, 32
    x = jax.random.normal(key, (batch, hidden), dtype=jnp.float32)

    # Deterministic params per the module __init__: scale=ones, bias=zeros.
    sc = jnp.ones((hidden,), dtype=jnp.float32)
    bc = jnp.zeros((hidden,), dtype=jnp.float32)

    out = layer_norm(x, sc, bc, eps=1e-5)
    out = jax.block_until_ready(out)

    # Pure-JAX reference (biased variance, like torch var(unbiased=False)).
    mean = jnp.mean(x, axis=1, keepdims=True)
    var = jnp.mean((x - mean) ** 2, axis=1, keepdims=True)
    ref = sc * ((x - mean) / jnp.sqrt(var + 1e-5)) + bc
    assert jnp.allclose(out, ref, atol=3e-5, rtol=1e-5), "mismatch vs reference"

    print("KERNEL_OK")
</pallas_src>

<mosaic_0001>
module attributes {stable_mosaic.version = 11 : i64} {
  func.func @layernorm_kernel(%arg0: i32, %arg1: memref<8x128xf32, #tpu.memory_space<vmem>>, %arg2: memref<1x128xf32, #tpu.memory_space<vmem>>, %arg3: memref<1x128xf32, #tpu.memory_space<vmem>>, %arg4: memref<8x128xf32, #tpu.memory_space<vmem>>) attributes {dimension_semantics = [#tpu.dimension_semantics<parallel>], iteration_bounds = array<i64: 1>, scalar_prefetch = 0 : i64, scratch_operands = 0 : i64, tpu.core_type = #tpu.core_type<tc>, window_params = [{transform_indices = @transform_0, window_bounds = array<i64: 8, 128>}, {pipeline_mode = #tpu.pipeline_mode<synchronous>, transform_indices = @transform_1, window_bounds = array<i64: 1, 128>}, {pipeline_mode = #tpu.pipeline_mode<synchronous>, transform_indices = @transform_2, window_bounds = array<i64: 1, 128>}, {transform_indices = @transform_3, window_bounds = array<i64: 8, 128>}]} {
    %c0 = arith.constant 0 : index
    %c0_0 = arith.constant 0 : index
    %0 = vector.load %arg1[%c0, %c0_0] : memref<8x128xf32, #tpu.memory_space<vmem>>, vector<8x128xf32>
    %cst = arith.constant dense<0.000000e+00> : vector<8xf32>
    %1 = vector.multi_reduction <add>, %0, %cst [1] : vector<8x128xf32> to vector<8xf32>
    %2 = vector.shape_cast %1 : vector<8xf32> to vector<8x1xf32>
    %cst_1 = arith.constant 3.125000e-02 : f32
    %3 = vector.broadcast %cst_1 : f32 to vector<8x1xf32>
    %4 = arith.mulf %2, %3 : vector<8x1xf32>
    %5 = arith.mulf %0, %0 : vector<8x128xf32>
    %cst_2 = arith.constant dense<0.000000e+00> : vector<8xf32>
    %6 = vector.multi_reduction <add>, %5, %cst_2 [1] : vector<8x128xf32> to vector<8xf32>
    %7 = vector.shape_cast %6 : vector<8xf32> to vector<8x1xf32>
    %cst_3 = arith.constant 3.125000e-02 : f32
    %8 = vector.broadcast %cst_3 : f32 to vector<8x1xf32>
    %9 = arith.mulf %7, %8 : vector<8x1xf32>
    %10 = arith.mulf %4, %4 : vector<8x1xf32>
    %11 = arith.subf %9, %10 : vector<8x1xf32>
    %cst_4 = arith.constant 0.000000e+00 : f32
    %12 = vector.broadcast %cst_4 : f32 to vector<8x1xf32>
    %13 = arith.maximumf %11, %12 : vector<8x1xf32>
    %cst_5 = arith.constant 9.99999974E-6 : f32
    %14 = vector.broadcast %cst_5 : f32 to vector<8x1xf32>
    %15 = arith.addf %13, %14 : vector<8x1xf32>
    %16 = math.rsqrt %15 : vector<8x1xf32>
    %17 = vector.broadcast %4 : vector<8x1xf32> to vector<8x128xf32>
    %18 = arith.subf %0, %17 : vector<8x128xf32>
    %19 = vector.broadcast %16 : vector<8x1xf32> to vector<8x128xf32>
    %20 = arith.mulf %18, %19 : vector<8x128xf32>
    %c0_6 = arith.constant 0 : index
    %c0_7 = arith.constant 0 : index
    %21 = vector.load %arg2[%c0_6, %c0_7] : memref<1x128xf32, #tpu.memory_space<vmem>>, vector<1x128xf32>
    %22 = vector.broadcast %21 : vector<1x128xf32> to vector<8x128xf32>
    %23 = arith.mulf %20, %22 : vector<8x128xf32>
    %c0_8 = arith.constant 0 : index
    %c0_9 = arith.constant 0 : index
    %24 = vector.load %arg3[%c0_8, %c0_9] : memref<1x128xf32, #tpu.memory_space<vmem>>, vector<1x128xf32>
    %25 = vector.broadcast %24 : vector<1x128xf32> to vector<8x128xf32>
    %26 = arith.addf %23, %25 : vector<8x128xf32>
    %c0_10 = arith.constant 0 : index
    %c0_11 = arith.constant 0 : index
    %27 = vector.load %arg4[%c0_10, %c0_11] : memref<8x128xf32, #tpu.memory_space<vmem>>, vector<8x128xf32>
    tpu.vector_store %arg4[%c0_10, %c0_11], %26 {strides = array<i32>} : memref<8x128xf32, #tpu.memory_space<vmem>>, vector<8x128xf32>,
    return
  }
  func.func @transform_0(%arg0: i32) -> (i32, i32) {
    %c0_i32 = arith.constant 0 : i32
    %c0_i32_0 = arith.constant 0 : i32
    return %arg0, %c0_i32 : i32, i32
  }
  func.func @transform_1(%arg0: i32) -> (i32, i32) {
    %c0_i32 = arith.constant 0 : i32
    %c0_i32_0 = arith.constant 0 : i32
    %c0_i32_1 = arith.constant 0 : i32
    return %c0_i32, %c0_i32_0 : i32, i32
  }
  func.func @transform_2(%arg0: i32) -> (i32, i32) {
    %c0_i32 = arith.constant 0 : i32
    %c0_i32_0 = arith.constant 0 : i32
    %c0_i32_1 = arith.constant 0 : i32
    return %c0_i32, %c0_i32_0 : i32, i32
  }
  func.func @transform_3(%arg0: i32) -> (i32, i32) {
    %c0_i32 = arith.constant 0 : i32
    %c0_i32_0 = arith.constant 0 : i32
    return %arg0, %c0_i32 : i32, i32
  }
}

</mosaic_0001>

<bundles_post_ra>
// kernel: tpu_custom_call.1
= control target key start
LH: loop header
LB: loop body
LE: loop exit
PB: predicated region body
PF: predicated region fallthrough
CT: control target
= control target key end

     0   :  { %8 = vsyncpa [#allocation3], 0  ;;  %s158_s0 = inlined_call_operand.hbm [shape: f32[8,128], index: 0, kind: input, shape index: {}]   ;;  %s159_s1 = inlined_call_operand.vmem [shape: f32[1,128], index: 1, kind: input, shape index: {}]   ;;  %s160_s2 = inlined_call_operand.vmem [shape: f32[1,128], index: 2, kind: input, shape index: {}]   ;;  %s161_s3 = inlined_call_operand.hbm [shape: f32[8,128], index: 3, kind: output, shape index: {}]  }
   0x1   :  { %9 = vsyncpa [#allocation4], 0  ;;  %s124_s12 = smov [#allocation2]  }
   0x2   :  { %s16_s13 = sshll.u32 %s124_s12, 4  ;;  %s17_s13 = int_to_ptr.vmem [resolvable:$true] %s16_s13 }
   0x3   :  { %s88_s14 = scalar_lea.vmem %s17_s13, 128  ;;  %p93_p1 = scmp.lt.s32.totalorder %s17_s13, %s17_s13 }
   0x4   :  { %p89_p0 = scmp.ne.s32.totalorder %s17_s13, %s88_s14  ;;  %p94_p2 = scmp.lt.s32.totalorder %s88_s14, %s88_s14 }
   0x6   :  { %p95_p3 = por %p94_p2, %p93_p1 }
   0x8   :  { %p96_p4 = pnand %p95_p3, %p89_p0 }
   0xa   :  { %99 = shalt.err (!%p96_p4)
}
   0xb   :  { %19 = dma.hbm_to_vmem [thread:$0]  %s158_s0, 128, %s17_s13, [#allocation3]  }
   0xc   :  { %120 = dma.done.wait [#allocation3], 128  }
   0xd   :  { %121 = vsyncadd [#allocation3], 4294967168  ;;  %v27_v0 = vld [vmem:[#allocation2] sm:$0xff]  ;;  %s125_s20 = smov [#allocation5]  }
   0xe   :  { %28 = vadd.xlane.f32.xlu0 %v27_v0  ;;  %v31_v1 = vmul.f32 %v27_v0, %v27_v0  ;;  %v74_v12 = vld [vmem:[%s159_s1] ss:$0 sm:$0xff]  ;;  %s65_s21 = sshll.u32 %s125_s20, 4  ;;  %s66_s21 = int_to_ptr.vmem [resolvable:$true] %s65_s21 }
   0xf   :  { %v75_v14 = vld [vmem:[%s160_s2] ss:$0 sm:$0xff]  ;;  %s100_s22 = scalar_lea.vmem %s66_s21, 128  ;;  %p105_p6 = scmp.lt.s32.totalorder %s66_s21, %s66_s21 }
  0x10   :  { %p101_p5 = scmp.ne.s32.totalorder %s66_s21, %s100_s22  ;;  %p106_p7 = scmp.lt.s32.totalorder %s100_s22, %s100_s22 }
  0x12   :  { %32 = vadd.xlane.f32.xlu0 %v31_v1  ;;  %p107_p8 = por %p106_p7, %p105_p6 }
  0x14   :  { %p108_p9 = pnand %p107_p8, %p101_p5 }
  0x97   :  { %v29_v2 = vpop.xlane.xlu0 %28 }
  0x98   :  { %v30_v3 = vmul.f32 0.03125, %v29_v2 }
  0x9a   :  { %v35_v5 = vmul.f32 %v30_v3, %v30_v3  ;;  %v40_v10 = vsub.f32 %v27_v0, %v30_v3 }
  0x9b   :  { %v33_v4 = vpop.xlane.xlu0 %32 }
  0x9c   :  { %v34_v6 = vmul.f32 0.03125, %v33_v4 }
  0x9e   :  { %v36_v7 = vsub.f32 %v34_v6, %v35_v5 }
  0xa0   :  { %v37_v8 = vmax.f32 %v36_v7, 0.0 }
  0xa2   :  { %v38_v9 = vadd.f32 1e-05, %v37_v8 }
  0xa4   :  { %78 = vrsqrt.f32 %v38_v9 }
  0xb1   :  { %v79_v11 = vpop.eup %78 }
  0xb2   :  { %v41_v13 = vmul.f32 %v79_v11, %v40_v10 }
  0xb4   :  { %v49_v15 = vmul.f32 %v74_v12, %v41_v13 }
  0xb6   :  { %v57_v16 = vadd.f32 %v75_v14, %v49_v15 }
  0xb8   :  { %58 = vst [vmem:[#allocation5] sm:$0xff] %v57_v16 }
  0xb9   :  { %111 = shalt.err (!%p108_p9)
}
  0xba   :  { %68 = dma.vmem_to_hbm [thread:$0]  %s66_s21, 128, %s161_s3, [#allocation4]  }
  0xbb   :  { %122 = dma.done.wait [#allocation4], 128  }
  0xbc   :  { %123 = vsyncadd [#allocation4], 4294967168 }
  0xbd   :  { %72 = vsyncpa [#allocation3], 1 }
  0xbe   :  { %73 = vsyncpa [#allocation4], 1 }

</bundles_post_ra>
